<compile_context>
chip_gen: v7x
topology: tpu7x:2x2x1
jax: 0.10.0
libtpu: 0.0.40
codegen_flags: <defaults>
</compile_context>

<pallas_src>
import functools

import jax
import jax.numpy as jnp
from jax.experimental import pallas as pl
from jax.experimental.pallas import tpu as pltpu

EPS = 1e-5
_LANE = 128
_SUBLANE = 8
_VMEM_LIMIT = 48 * 1024 * 1024   # explicit scoped-VMEM limit; fits v7x's 64 MiB/TC
_VMEM_BUDGET = 36 * 1024 * 1024  # ~25% headroom under the limit when sizing tiles


def _round_up(x, m):
    return ((x + m - 1) // m) * m


def _choose_m_tile(M, Kp, Cp, target=256):
    """Pick an M tile (multiple of 8 sublanes) whose double-buffered blocks fit VMEM."""
    tm = max(_SUBLANE, _round_up(target, _SUBLANE))

    def need(t):
        # pass 1: 2x patch bufs (bf16) + 2x y bufs (f32) + resident weights + stats
        k1 = 2 * t * Kp * 2 + 2 * t * Cp * 4 + 2 * Kp * Cp * 2 + 16 * Cp * 4
        # pass 2: 2x y bufs (f32) + 2x out bufs (f32) + per-channel params
        k2 = 4 * t * Cp * 4 + 32 * Cp * 4
        return max(k1, k2)

    while tm > _SUBLANE and need(tm) > _VMEM_BUDGET:
        tm //= 2
    return max(_SUBLANE, min(tm, _round_up(M, _SUBLANE)))


def _conv_stats_kernel(p_ref, w_ref, y_ref, sum_ref, ssq_ref, acc_sum, acc_ssq):
    """Per (group, M-tile): conv as one MXU matmul + BN partial sums in f32 scratch."""
    m = pl.program_id(1)

    @pl.when(m == 0)
    def _init():
        acc_sum[...] = jnp.zeros_like(acc_sum)
        acc_ssq[...] = jnp.zeros_like(acc_ssq)

    # bf16 inputs, f32 accumulation on the MXU.
    y = jnp.dot(p_ref[0], w_ref[0], preferred_element_type=jnp.float32)  # (tm, Cp)
    y_ref[0] = y

    acc_sum[...] += jnp.sum(y, axis=0, keepdims=True)
    acc_ssq[...] += jnp.sum(y * y, axis=0, keepdims=True)

    @pl.when(m == pl.num_programs(1) - 1)
    def _finalize():
        sum_ref[0] = acc_sum[...]
        ssq_ref[0] = acc_ssq[...]


def _bn_relu_kernel(y_ref, sum_ref, ssq_ref, gamma_ref, beta_ref, o_ref, *, inv_count):
    """Per (group, M-tile): BN folded into two per-channel constants, then ReLU."""
    mean = sum_ref[0] * inv_count                       # (1, Cp) f32
    var = ssq_ref[0] * inv_count - mean * mean          # biased (training-mode) variance
    a = gamma_ref[0] * jax.lax.rsqrt(var + EPS)
    b = beta_ref[0] - mean * a
    o_ref[0] = jnp.maximum(y_ref[0] * a + b, 0.0).astype(o_ref.dtype)


@functools.partial(jax.jit, static_argnames=("stride", "groups", "tm_target"))
def conv_bn_relu(x, weight, gamma, beta, *, stride=1, groups=1, tm_target=256):
    """x: (N, Cin, H, W) NCHW, weight: (Cout, Cin//groups, 3, 3) OIHW,
    gamma/beta: (Cout,). Returns (N, Cout, Ho, Wo) NCHW."""
    N, Cin, H, W = x.shape
    Cout = weight.shape[0]
    Cing = Cin // groups
    Cpg = Cout // groups
    K = Cing * 9
    Ho = (H + 2 - 3) // stride + 1
    Wo = (W + 2 - 3) // stride + 1
    M = N * Ho * Wo

    Kp = _round_up(K, _LANE)          # aligned contraction dim
    Cp = _round_up(Cpg, _LANE)        # lane-dense output channels (>=128)
    tm = _choose_m_tile(M, Kp, Cp, tm_target)
    Mp = _round_up(M, tm)
    n_mt = Mp // tm

    # --- glue: zero-pad + im2col patch extraction per group (pure JAX, no compute) ---
    # TODO(synk): replace the 9x im2col expansion with 9 accumulated in-kernel matmuls
    # over shifted NHWC views to cut HBM read traffic ~9x at stride=1.
    xp = jnp.pad(x, ((0, 0), (0, 0), (1, 1), (1, 1)))
    patches_g, w_g = [], []
    for g in range(groups):
        xg = xp[:, g * Cing:(g + 1) * Cing]                          # (N, Cing, H+2, W+2)
        taps = []
        for ky in range(3):
            for kx in range(3):
                taps.append(
                    xg[:, :,
                       ky:ky + (Ho - 1) * stride + 1:stride,
                       kx:kx + (Wo - 1) * stride + 1:stride])        # (N, Cing, Ho, Wo)
        tap = jnp.stack(taps, axis=0)                                # (9, N, Cing, Ho, Wo)
        # flattening order (ci, ky*3+kx) matches weight.reshape(Cpg, Cing*9)
        patches_g.append(tap.transpose(1, 3, 4, 2, 0).reshape(M, K))
        w_g.append(weight[g * Cpg:(g + 1) * Cpg].reshape(Cpg, K).T)  # (K, Cpg)

    # bf16 MXU inputs; zero-pad K->Kp, Cpg->Cp, M->Mp (zero rows/cols contribute
    # nothing to the matmul or the BN sums and are sliced off at the end).
    patches = jnp.stack(patches_g, axis=0)                           # (G, M, K)
    patches = jnp.pad(patches, ((0, 0), (0, Mp - M), (0, Kp - K))).astype(jnp.bfloat16)
    wmat = jnp.stack(w_g, axis=0)                                    # (G, K, Cpg)
    wmat = jnp.pad(wmat, ((0, 0), (0, Kp - K), (0, Cp - Cpg))).astype(jnp.bfloat16)
    gam = jnp.pad(gamma.reshape(groups, 1, Cpg),
                  ((0, 0), (0, 0), (0, Cp - Cpg))).astype(jnp.float32)
    bet = jnp.pad(beta.reshape(groups, 1, Cpg),
                  ((0, 0), (0, 0), (0, Cp - Cpg))).astype(jnp.float32)

    # --- pass 1: conv (MXU) + BN partial sums, M-tiled & software-pipelined ---
    y, ysum, yssq = pl.pallas_call(
        _conv_stats_kernel,
        out_shape=(
            jax.ShapeDtypeStruct((groups, Mp, Cp), jnp.float32),
            jax.ShapeDtypeStruct((groups, 1, Cp), jnp.float32),
            jax.ShapeDtypeStruct((groups, 1, Cp), jnp.float32),
        ),
        grid_spec=pltpu.PrefetchScalarGridSpec(
            num_scalar_prefetch=0,
            grid=(groups, n_mt),                                     # m innermost
            in_specs=[
                pl.BlockSpec((1, tm, Kp), lambda g, m: (g, m, 0)),   # patches advance with m
                pl.BlockSpec((1, Kp, Cp), lambda g, m: (g, 0, 0)),   # weights resident over m
            ],
            out_specs=[
                pl.BlockSpec((1, tm, Cp), lambda g, m: (g, m, 0)),
                pl.BlockSpec((1, 1, Cp), lambda g, m: (g, 0, 0)),
                pl.BlockSpec((1, 1, Cp), lambda g, m: (g, 0, 0)),
            ],
            scratch_shapes=[
                pltpu.VMEM((1, Cp), jnp.float32),
                pltpu.VMEM((1, Cp), jnp.float32),
            ],
        ),
        compiler_params=pltpu.CompilerParams(
            dimension_semantics=("parallel", "arbitrary"),
            vmem_limit_bytes=_VMEM_LIMIT,
        ),
    )(patches, wmat)

    # --- pass 2: finalize BN (y*a + b) + ReLU, fully parallel over (g, m) ---
    out = pl.pallas_call(
        functools.partial(_bn_relu_kernel, inv_count=1.0 / M),
        out_shape=jax.ShapeDtypeStruct((groups, Mp, Cp), x.dtype),
        grid_spec=pltpu.PrefetchScalarGridSpec(
            num_scalar_prefetch=0,
            grid=(groups, n_mt),
            in_specs=[
                pl.BlockSpec((1, tm, Cp), lambda g, m: (g, m, 0)),
                pl.BlockSpec((1, 1, Cp), lambda g, m: (g, 0, 0)),
                pl.BlockSpec((1, 1, Cp), lambda g, m: (g, 0, 0)),
                pl.BlockSpec((1, 1, Cp), lambda g, m: (g, 0, 0)),
                pl.BlockSpec((1, 1, Cp), lambda g, m: (g, 0, 0)),
            ],
            out_specs=pl.BlockSpec((1, tm, Cp), lambda g, m: (g, m, 0)),
        ),
        compiler_params=pltpu.CompilerParams(
            dimension_semantics=("parallel", "parallel"),
            vmem_limit_bytes=_VMEM_LIMIT,
        ),
    )(y, ysum, yssq, gam, bet)

    # (G, Mp, Cp) -> (N, Cout, Ho, Wo); channel c = g*Cpg + c'
    out = out[:, :M, :Cpg].reshape(groups, N, Ho, Wo, Cpg)
    out = out.transpose(1, 0, 4, 2, 3).reshape(N, Cout, Ho, Wo)
    return out


def _reference(x, weight, gamma, beta, stride, groups):
    y = jax.lax.conv_general_dilated(
        x, weight, window_strides=(stride, stride), padding=((1, 1), (1, 1)),
        dimension_numbers=("NCHW", "OIHW", "NCHW"), feature_group_count=groups,
        precision=jax.lax.Precision.HIGHEST)
    mean = y.mean(axis=(0, 2, 3), keepdims=True)
    var = jnp.square(y - mean).mean(axis=(0, 2, 3), keepdims=True)
    yn = (y - mean) * jax.lax.rsqrt(var + EPS) * gamma.reshape(1, -1, 1, 1) \
         + beta.reshape(1, -1, 1, 1)
    return jnp.maximum(yn, 0.0)


if __name__ == "__main__":
    key = jax.random.PRNGKey(0)
    kx, kw, kg, kb = jax.random.split(key, 4)

    N, Cin, H, W = 2, 4, 16, 16
    Cout = 8
    x = jax.random.normal(kx, (N, Cin, H, W), jnp.float32)

    # Two configs exercising stride / groups behavior of the module.
    for stride, groups in [(1, 1), (2, 2)]:
        weight = 0.1 * jax.random.normal(kw, (Cout, Cin // groups, 3, 3), jnp.float32)
        gamma = 1.0 + 0.1 * jax.random.normal(kg, (Cout,), jnp.float32)
        beta = 0.1 * jax.random.normal(kb, (Cout,), jnp.float32)

        out = conv_bn_relu(x, weight, gamma, beta, stride=stride, groups=groups)
        out = jax.block_until_ready(out)

        ref = _reference(x, weight, gamma, beta, stride, groups)
        assert out.shape == ref.shape, (out.shape, ref.shape)
        # bf16 MXU inputs (f32 accumulation): tolerance accounts for bf16 input rounding.
        assert jnp.allclose(out, ref, atol=5e-2, rtol=5e-2), \
            f"mismatch for stride={stride} groups={groups}"

    print("KERNEL_OK")
</pallas_src>

<mosaic_0001>
module attributes {stable_mosaic.version = 11 : i64} {
  func.func @_bn_relu_kernel(%arg0: i32, %arg1: i32, %arg2: memref<1x256x128xf32, #tpu.memory_space<vmem>>, %arg3: memref<1x1x128xf32, #tpu.memory_space<vmem>>, %arg4: memref<1x1x128xf32, #tpu.memory_space<vmem>>, %arg5: memref<1x1x128xf32, #tpu.memory_space<vmem>>, %arg6: memref<1x1x128xf32, #tpu.memory_space<vmem>>, %arg7: memref<1x256x128xf32, #tpu.memory_space<vmem>>) attributes {dimension_semantics = [#tpu.dimension_semantics<parallel>, #tpu.dimension_semantics<parallel>], iteration_bounds = array<i64: 1, 2>, scalar_prefetch = 0 : i64, scratch_operands = 0 : i64, tpu.core_type = #tpu.core_type<tc>, window_params = [{transform_indices = @transform_0, window_bounds = array<i64: 1, 256, 128>}, {transform_indices = @transform_1, window_bounds = array<i64: 1, 1, 128>}, {transform_indices = @transform_2, window_bounds = array<i64: 1, 1, 128>}, {transform_indices = @transform_3, window_bounds = array<i64: 1, 1, 128>}, {transform_indices = @transform_4, window_bounds = array<i64: 1, 1, 128>}, {transform_indices = @transform_5, window_bounds = array<i64: 1, 256, 128>}]} {
    %c0 = arith.constant 0 : index
    %c0_0 = arith.constant 0 : index
    %c0_1 = arith.constant 0 : index
    %0 = vector.load %arg3[%c0, %c0_0, %c0_1] : memref<1x1x128xf32, #tpu.memory_space<vmem>>, vector<1x1x128xf32>
    %1 = vector.shape_cast %0 : vector<1x1x128xf32> to vector<1x128xf32>
    %cst = arith.constant 0.001953125 : f32
    %2 = vector.broadcast %cst : f32 to vector<1x128xf32>
    %3 = arith.mulf %1, %2 : vector<1x128xf32>
    %c0_2 = arith.constant 0 : index
    %c0_3 = arith.constant 0 : index
    %c0_4 = arith.constant 0 : index
    %4 = vector.load %arg4[%c0_2, %c0_3, %c0_4] : memref<1x1x128xf32, #tpu.memory_space<vmem>>, vector<1x1x128xf32>
    %5 = vector.shape_cast %4 : vector<1x1x128xf32> to vector<1x128xf32>
    %cst_5 = arith.constant 0.001953125 : f32
    %6 = vector.broadcast %cst_5 : f32 to vector<1x128xf32>
    %7 = arith.mulf %5, %6 : vector<1x128xf32>
    %8 = arith.mulf %3, %3 : vector<1x128xf32>
    %9 = arith.subf %7, %8 : vector<1x128xf32>
    %c0_6 = arith.constant 0 : index
    %c0_7 = arith.constant 0 : index
    %c0_8 = arith.constant 0 : index
    %10 = vector.load %arg5[%c0_6, %c0_7, %c0_8] : memref<1x1x128xf32, #tpu.memory_space<vmem>>, vector<1x1x128xf32>
    %11 = vector.shape_cast %10 : vector<1x1x128xf32> to vector<1x128xf32>
    %cst_9 = arith.constant 9.99999974E-6 : f32
    %12 = vector.broadcast %cst_9 : f32 to vector<1x128xf32>
    %13 = arith.addf %9, %12 : vector<1x128xf32>
    %14 = math.rsqrt %13 : vector<1x128xf32>
    %15 = arith.mulf %11, %14 : vector<1x128xf32>
    %c0_10 = arith.constant 0 : index
    %c0_11 = arith.constant 0 : index
    %c0_12 = arith.constant 0 : index
    %16 = vector.load %arg6[%c0_10, %c0_11, %c0_12] : memref<1x1x128xf32, #tpu.memory_space<vmem>>, vector<1x1x128xf32>
    %17 = vector.shape_cast %16 : vector<1x1x128xf32> to vector<1x128xf32>
    %18 = arith.mulf %3, %15 : vector<1x128xf32>
    %19 = arith.subf %17, %18 : vector<1x128xf32>
    %c0_13 = arith.constant 0 : index
    %c0_14 = arith.constant 0 : index
    %c0_15 = arith.constant 0 : index
    %20 = vector.load %arg2[%c0_13, %c0_14, %c0_15] : memref<1x256x128xf32, #tpu.memory_space<vmem>>, vector<1x256x128xf32>
    %21 = vector.shape_cast %20 : vector<1x256x128xf32> to vector<256x128xf32>
    %22 = vector.broadcast %15 : vector<1x128xf32> to vector<256x128xf32>
    %23 = arith.mulf %21, %22 : vector<256x128xf32>
    %24 = vector.broadcast %19 : vector<1x128xf32> to vector<256x128xf32>
    %25 = arith.addf %23, %24 : vector<256x128xf32>
    %cst_16 = arith.constant 0.000000e+00 : f32
    %26 = vector.broadcast %cst_16 : f32 to vector<256x128xf32>
    %27 = arith.maximumf %25, %26 : vector<256x128xf32>
    %c0_17 = arith.constant 0 : index
    %c0_18 = arith.constant 0 : index
    %c0_19 = arith.constant 0 : index
    %28 = vector.load %arg7[%c0_17, %c0_18, %c0_19] : memref<1x256x128xf32, #tpu.memory_space<vmem>>, vector<1x256x128xf32>
    %29 = vector.shape_cast %28 : vector<1x256x128xf32> to vector<256x128xf32>
    %30 = vector.shape_cast %27 : vector<256x128xf32> to vector<1x256x128xf32>
    tpu.vector_store %arg7[%c0_17, %c0_18, %c0_19], %30 {strides = array<i32>} : memref<1x256x128xf32, #tpu.memory_space<vmem>>, vector<1x256x128xf32>,
    return
  }
  func.func @transform_0(%arg0: i32, %arg1: i32) -> (i32, i32, i32) {
    %c0_i32 = arith.constant 0 : i32
    %c0_i32_0 = arith.constant 0 : i32
    return %arg0, %arg1, %c0_i32 : i32, i32, i32
  }
  func.func @transform_1(%arg0: i32, %arg1: i32) -> (i32, i32, i32) {
    %c0_i32 = arith.constant 0 : i32
    %c0_i32_0 = arith.constant 0 : i32
    %c0_i32_1 = arith.constant 0 : i32
    return %arg0, %c0_i32, %c0_i32_0 : i32, i32, i32
  }
  func.func @transform_2(%arg0: i32, %arg1: i32) -> (i32, i32, i32) {
    %c0_i32 = arith.constant 0 : i32
    %c0_i32_0 = arith.constant 0 : i32
    %c0_i32_1 = arith.constant 0 : i32
    return %arg0, %c0_i32, %c0_i32_0 : i32, i32, i32
  }
  func.func @transform_3(%arg0: i32, %arg1: i32) -> (i32, i32, i32) {
    %c0_i32 = arith.constant 0 : i32
    %c0_i32_0 = arith.constant 0 : i32
    %c0_i32_1 = arith.constant 0 : i32
    return %arg0, %c0_i32, %c0_i32_0 : i32, i32, i32
  }
  func.func @transform_4(%arg0: i32, %arg1: i32) -> (i32, i32, i32) {
    %c0_i32 = arith.constant 0 : i32
    %c0_i32_0 = arith.constant 0 : i32
    %c0_i32_1 = arith.constant 0 : i32
    return %arg0, %c0_i32, %c0_i32_0 : i32, i32, i32
  }
  func.func @transform_5(%arg0: i32, %arg1: i32) -> (i32, i32, i32) {
    %c0_i32 = arith.constant 0 : i32
    %c0_i32_0 = arith.constant 0 : i32
    return %arg0, %arg1, %c0_i32 : i32, i32, i32
  }
}

module attributes {stable_mosaic.version = 11 : i64} {
  func.func @_conv_stats_kernel(%arg0: i32, %arg1: i32, %arg2: memref<1x256x128xbf16, #tpu.memory_space<vmem>>, %arg3: memref<1x128x128xbf16, #tpu.memory_space<vmem>>, %arg4: memref<1x256x128xf32, #tpu.memory_space<vmem>>, %arg5: memref<1x1x128xf32, #tpu.memory_space<vmem>>, %arg6: memref<1x1x128xf32, #tpu.memory_space<vmem>>, %arg7: memref<1x128xf32, #tpu.memory_space<vmem>>, %arg8: memref<1x128xf32, #tpu.memory_space<vmem>>) attributes {dimension_semantics = [#tpu.dimension_semantics<parallel>, #tpu.dimension_semantics<arbitrary>], iteration_bounds = array<i64: 1, 2>, scalar_prefetch = 0 : i64, scratch_operands = 2 : i64, tpu.core_type = #tpu.core_type<tc>, window_params = [{transform_indices = @transform_0, window_bounds = array<i64: 1, 256, 128>}, {transform_indices = @transform_1, window_bounds = array<i64: 1, 128, 128>}, {transform_indices = @transform_2, window_bounds = array<i64: 1, 256, 128>}, {transform_indices = @transform_3, window_bounds = array<i64: 1, 1, 128>}, {transform_indices = @transform_4, window_bounds = array<i64: 1, 1, 128>}]} {
    %c0_i32 = arith.constant 0 : i32
    %0 = arith.cmpi eq, %arg1, %c0_i32 : i32
    %1 = arith.extui %0 : i1 to i32
    %c0_i32_0 = arith.constant 0 : i32
    %2 = arith.cmpi ne, %1, %c0_i32_0 : i32
    scf.if %2 {
      %cst_20 = arith.constant 0.000000e+00 : f32
      %25 = vector.broadcast %cst_20 : f32 to vector<1x128xf32>
      %c0_21 = arith.constant 0 : index
      %c0_22 = arith.constant 0 : index
      %26 = vector.load %arg7[%c0_21, %c0_22] : memref<1x128xf32, #tpu.memory_space<vmem>>, vector<1x128xf32>
      tpu.vector_store %arg7[%c0_21, %c0_22], %25 {strides = array<i32>} : memref<1x128xf32, #tpu.memory_space<vmem>>, vector<1x128xf32>,
      %cst_23 = arith.constant 0.000000e+00 : f32
      %27 = vector.broadcast %cst_23 : f32 to vector<1x128xf32>
      %c0_24 = arith.constant 0 : index
      %c0_25 = arith.constant 0 : index
      %28 = vector.load %arg8[%c0_24, %c0_25] : memref<1x128xf32, #tpu.memory_space<vmem>>, vector<1x128xf32>
      tpu.vector_store %arg8[%c0_24, %c0_25], %27 {strides = array<i32>} : memref<1x128xf32, #tpu.memory_space<vmem>>, vector<1x128xf32>,
    } else {
    }
    %c0 = arith.constant 0 : index
    %c0_1 = arith.constant 0 : index
    %c0_2 = arith.constant 0 : index
    %3 = vector.load %arg2[%c0, %c0_1, %c0_2] : memref<1x256x128xbf16, #tpu.memory_space<vmem>>, vector<1x256x128xbf16>
    %4 = vector.shape_cast %3 : vector<1x256x128xbf16> to vector<256x128xbf16>
    %c0_3 = arith.constant 0 : index
    %c0_4 = arith.constant 0 : index
    %c0_5 = arith.constant 0 : index
    %5 = vector.load %arg3[%c0_3, %c0_4, %c0_5] : memref<1x128x128xbf16, #tpu.memory_space<vmem>>, vector<1x128x128xbf16>
    %6 = vector.shape_cast %5 : vector<1x128x128xbf16> to vector<128x128xbf16>
    %cst = arith.constant dense<0.000000e+00> : vector<256x128xf32>
    %7 = tpu.matmul %4, %6, %cst {dimension_numbers = #tpu.dot_dimension_numbers<[1], [0], [0], [1], [0, 0, 1, 1], [], []>} : vector<256x128xbf16>, vector<128x128xbf16>, vector<256x128xf32> -> vector<256x128xf32>
    %c0_6 = arith.constant 0 : index
    %c0_7 = arith.constant 0 : index
    %c0_8 = arith.constant 0 : index
    %8 = vector.load %arg4[%c0_6, %c0_7, %c0_8] : memref<1x256x128xf32, #tpu.memory_space<vmem>>, vector<1x256x128xf32>
    %9 = vector.shape_cast %8 : vector<1x256x128xf32> to vector<256x128xf32>
    %10 = vector.shape_cast %7 : vector<256x128xf32> to vector<1x256x128xf32>
    tpu.vector_store %arg4[%c0_6, %c0_7, %c0_8], %10 {strides = array<i32>} : memref<1x256x128xf32, #tpu.memory_space<vmem>>, vector<1x256x128xf32>,
    %c0_9 = arith.constant 0 : index
    %c0_10 = arith.constant 0 : index
    %11 = vector.load %arg7[%c0_9, %c0_10] : memref<1x128xf32, #tpu.memory_space<vmem>>, vector<1x128xf32>
    %cst_11 = arith.constant dense<0.000000e+00> : vector<128xf32>
    %12 = vector.multi_reduction <add>, %7, %cst_11 [0] : vector<256x128xf32> to vector<128xf32>
    %13 = vector.shape_cast %12 : vector<128xf32> to vector<1x128xf32>
    %14 = arith.addf %11, %13 : vector<1x128xf32>
    %c0_12 = arith.constant 0 : index
    %c0_13 = arith.constant 0 : index
    %15 = vector.load %arg7[%c0_12, %c0_13] : memref<1x128xf32, #tpu.memory_space<vmem>>, vector<1x128xf32>
    tpu.vector_store %arg7[%c0_12, %c0_13], %14 {strides = array<i32>} : memref<1x128xf32, #tpu.memory_space<vmem>>, vector<1x128xf32>,
    %c0_14 = arith.constant 0 : index
    %c0_15 = arith.constant 0 : index
    %16 = vector.load %arg8[%c0_14, %c0_15] : memref<1x128xf32, #tpu.memory_space<vmem>>, vector<1x128xf32>
    %17 = arith.mulf %7, %7 : vector<256x128xf32>
    %cst_16 = arith.constant dense<0.000000e+00> : vector<128xf32>
    %18 = vector.multi_reduction <add>, %17, %cst_16 [0] : vector<256x128xf32> to vector<128xf32>
    %19 = vector.shape_cast %18 : vector<128xf32> to vector<1x128xf32>
    %20 = arith.addf %16, %19 : vector<1x128xf32>
    %c0_17 = arith.constant 0 : index
    %c0_18 = arith.constant 0 : index
    %21 = vector.load %arg8[%c0_17, %c0_18] : memref<1x128xf32, #tpu.memory_space<vmem>>, vector<1x128xf32>
    tpu.vector_store %arg8[%c0_17, %c0_18], %20 {strides = array<i32>} : memref<1x128xf32, #tpu.memory_space<vmem>>, vector<1x128xf32>,
    %c1_i32 = arith.constant 1 : i32
    %22 = arith.cmpi eq, %arg1, %c1_i32 : i32
    %23 = arith.extui %22 : i1 to i32
    %c0_i32_19 = arith.constant 0 : i32
    %24 = arith.cmpi ne, %23, %c0_i32_19 : i32
    scf.if %24 {
      %c0_20 = arith.constant 0 : index
      %c0_21 = arith.constant 0 : index
      %25 = vector.load %arg7[%c0_20, %c0_21] : memref<1x128xf32, #tpu.memory_space<vmem>>, vector<1x128xf32>
      %c0_22 = arith.constant 0 : index
      %c0_23 = arith.constant 0 : index
      %c0_24 = arith.constant 0 : index
      %26 = vector.load %arg5[%c0_22, %c0_23, %c0_24] : memref<1x1x128xf32, #tpu.memory_space<vmem>>, vector<1x1x128xf32>
      %27 = vector.shape_cast %26 : vector<1x1x128xf32> to vector<1x128xf32>
      %28 = vector.shape_cast %25 : vector<1x128xf32> to vector<1x1x128xf32>
      tpu.vector_store %arg5[%c0_22, %c0_23, %c0_24], %28 {strides = array<i32>} : memref<1x1x128xf32, #tpu.memory_space<vmem>>, vector<1x1x128xf32>,
      %c0_25 = arith.constant 0 : index
      %c0_26 = arith.constant 0 : index
      %29 = vector.load %arg8[%c0_25, %c0_26] : memref<1x128xf32, #tpu.memory_space<vmem>>, vector<1x128xf32>
      %c0_27 = arith.constant 0 : index
      %c0_28 = arith.constant 0 : index
      %c0_29 = arith.constant 0 : index
      %30 = vector.load %arg6[%c0_27, %c0_28, %c0_29] : memref<1x1x128xf32, #tpu.memory_space<vmem>>, vector<1x1x128xf32>
      %31 = vector.shape_cast %30 : vector<1x1x128xf32> to vector<1x128xf32>
      %32 = vector.shape_cast %29 : vector<1x128xf32> to vector<1x1x128xf32>
      tpu.vector_store %arg6[%c0_27, %c0_28, %c0_29], %32 {strides = array<i32>} : memref<1x1x128xf32, #tpu.memory_space<vmem>>, vector<1x1x128xf32>,
    } else {
    }
    return
  }
  func.func @transform_0(%arg0: i32, %arg1: i32) -> (i32, i32, i32) {
    %c0_i32 = arith.constant 0 : i32
    %c0_i32_0 = arith.constant 0 : i32
    return %arg0, %arg1, %c0_i32 : i32, i32, i32
  }
  func.func @transform_1(%arg0: i32, %arg1: i32) -> (i32, i32, i32) {
    %c0_i32 = arith.constant 0 : i32
    %c0_i32_0 = arith.constant 0 : i32
    %c0_i32_1 = arith.constant 0 : i32
    return %arg0, %c0_i32, %c0_i32_0 : i32, i32, i32
  }
  func.func @transform_2(%arg0: i32, %arg1: i32) -> (i32, i32, i32) {
    %c0_i32 = arith.constant 0 : i32
    %c0_i32_0 = arith.constant 0 : i32
    return %arg0, %arg1, %c0_i32 : i32, i32, i32
  }
  func.func @transform_3(%arg0: i32, %arg1: i32) -> (i32, i32, i32) {
    %c0_i32 = arith.constant 0 : i32
    %c0_i32_0 = arith.constant 0 : i32
    %c0_i32_1 = arith.constant 0 : i32
    return %arg0, %c0_i32, %c0_i32_0 : i32, i32, i32
  }
  func.func @transform_4(%arg0: i32, %arg1: i32) -> (i32, i32, i32) {
    %c0_i32 = arith.constant 0 : i32
    %c0_i32_0 = arith.constant 0 : i32
    %c0_i32_1 = arith.constant 0 : i32
    return %arg0, %c0_i32, %c0_i32_0 : i32, i32, i32
  }
}

</mosaic_0001>

<bundles_post_ra>
// kernel: conv_bn_relu.3
= control target key start
LH: loop header
LB: loop body
LE: loop exit
PB: predicated region body
PF: predicated region fallthrough
CT: control target
= control target key end

     0   :  { %s735_s18 = smov 0   ;;  %s737_s19 = smov 0   ;;  %s923_s0 = inlined_call_operand.vmem [shape: f32[1,512,128], index: 0, kind: input, shape index: {}]   ;;  %s924_s1 = inlined_call_operand.vmem [shape: f32[1,1,128], index: 1, kind: input, shape index: {}]   ;;  %s925_s2 = inlined_call_operand.vmem [shape: f32[1,1,128], index: 2, kind: input, shape index: {}]   ;;  %s926_s3 = inlined_call_operand.vmem [shape: f32[1,1,128], index: 3, kind: input, shape index: {}]   ;;  %s927_s4 = inlined_call_operand.vmem [shape: f32[1,1,128], index: 4, kind: input, shape index: {}]   ;;  %s928_s5 = inlined_call_operand.vmem [shape: f32[1,512,128], index: 5, kind: output, shape index: {}]  }
   0x1   :  { %s739_s20 = smov 0  }
   0x2 LB: > { %s24_s21 = sadd.s32 1, %s699_s19  ;;  %p648_p0 = scmp.ge.s32.totalorder %s703_s20, 1  ;;  %s703_s20 = sphi %s739_s20, %s15_s20   ;;  %s699_s19 = sphi %s737_s19, %s930_s19   ;;  %s695_s18 = sphi %s735_s18, %s929_s18  }
   0x3   : > { %p25_p1 = scmp.ge.s32.totalorder %s24_s21, 2  ;;  %p240_p2 = scmp.lt.s32.totalorder %s703_s20, 3 }
   0x5   : > { %s932_s21 = smov (%p25_p1, %s24_s21), 0  ;;  %p241_p3 = pnand %p648_p0, %p240_p2 }
   0x6   : > { %v320_v0 = vld [vmem:[%s924_s1] sm:$0x1] (!%p241_p3)  ;;  %s649_s26 = sshll.u32 (!%p241_p3), %s695_s18, 5  ;;  %v366_v7 = vlaneseq (!%p241_p3) }
   0x7   : > { %244 = sbr.rel (%p241_p3) target bundleno = 60 (0x3c), region = 40  ;;  %v322_v1 = vld [vmem:[%s925_s2] sm:$0x1] (!%p241_p3)  ;;  %v321_v2 = vmul.f32 (!%p241_p3), 0.001953125, %v320_v0  ;;  %p291_p4 = scmp.lt.s32.totalorder (!%p241_p3), %s649_s26, 63 }
   0x8   : > { %v323_v3 = vmul.f32 (!%p241_p3), 0.001953125, %v322_v1  ;;  %v367_v8 = vshrl.u32 (!%p241_p3), %v366_v7, 7  ;;  %v326_v9 = vld [vmem:[%s926_s3] sm:$0x1] (!%p241_p3) }
   0x9   : > { %v324_v4 = vmul.f32 (!%p241_p3), %v321_v2, %v321_v2  ;;  %v330_v13 = vld [vmem:[%s927_s4] sm:$0x1] (!%p241_p3) }
   0xa   : > { %v368_v10 = vsub.s32 (!%p241_p3), 0, %v367_v8 }
   0xb   : > { %v325_v5 = vsub.f32 (!%p241_p3), %v323_v3, %v324_v4 }
   0xd   : > { %v327_v6 = vadd.f32 (!%p241_p3), 1e-05, %v325_v5 }
   0xe   : > { %s934_s26 = smov (!%p291_p4, %s649_s26), 63 }
   0xf   : > { %679 = vrsqrt.f32 %v327_v6  ;;  %s650_s27 = sshll.u32 %s934_s26, 3 }
  0x10   : > { %s767_s30 = scalar_lea.vmem %s923_s0, %s650_s27  ;;  %s816_s12 = scalar_lea.vmem %s928_s5, %s650_s27 }
  0x11   : > { %v333_v14 = vld [vmem:[%s767_s30] sm:$0xff]  ;;  %v334_v15 = vld [vmem:[%s767_s30 + $0x8] sm:$0xff]  ;;  %v335_v16 = vld [vmem:[%s767_s30 + $0x10] sm:$0xff] }
  0x12   : > { %v336_v17 = vld [vmem:[%s767_s30 + $0x18] sm:$0xff]  ;;  %v337_v18 = vld [vmem:[%s767_s30 + $0x20] sm:$0xff]  ;;  %v338_v21 = vld [vmem:[%s767_s30 + $0x28] sm:$0xff] }
  0x13   : > { %v339_v22 = vld [vmem:[%s767_s30 + $0x30] sm:$0xff]  ;;  %v340_v23 = vld [vmem:[%s767_s30 + $0x38] sm:$0xff]  ;;  %v341_v24 = vld [vmem:[%s767_s30 + $0x40] sm:$0xff] }
  0x14   : > { %v342_v25 = vld [vmem:[%s767_s30 + $0x48] sm:$0xff]  ;;  %v343_v26 = vld [vmem:[%s767_s30 + $0x50] sm:$0xff]  ;;  %v344_v31 = vld [vmem:[%s767_s30 + $0x58] sm:$0xff] }
  0x15   : > { %v345_v32 = vld [vmem:[%s767_s30 + $0x60] sm:$0xff]  ;;  %v346_v33 = vld [vmem:[%s767_s30 + $0x68] sm:$0xff]  ;;  %v347_v58 = vld [vmem:[%s767_s30 + $0x70] sm:$0xff] }
  0x16   : > { %v348_v59 = vld [vmem:[%s767_s30 + $0x78] sm:$0xff]  ;;  %v349_v4 = vld [vmem:[%s767_s30 + $0x80] sm:$0xff] }
  0x19   : > { %v680_v11 = vpop.eup %679 }
  0x1a   : > { %v329_v12 = vmul.f32 %v680_v11, %v326_v9  ;;  %v350_v9 = vld [vmem:[%s767_s30 + $0x88] sm:$0xff]  ;;  %v352_v11 = vld [vmem:[%s767_s30 + $0x98] sm:$0xff] }
  0x1c   : > { %v331_v19 = vmul.f32 %v329_v12, %v321_v2  ;;  %v780_v20 = vrot.slane %v329_v12, %v368_v10 }
  0x1e   : > { %v332_v27 = vsub.f32 %v330_v13, %v331_v19  ;;  %v371_v28 = vmul.f32 %v780_v20, %v333_v14  ;;  %v372_v29 = vmul.f32 %v780_v20, %v334_v15  ;;  %v373_v30 = vmul.f32 %v780_v20, %v335_v16  ;;  %v353_v16 = vld [vmem:[%s767_s30 + $0xa0] sm:$0xff] }
  0x1f   : > { %v374_v34 = vmul.f32 %v780_v20, %v336_v17  ;;  %v375_v35 = vmul.f32 %v780_v20, %v337_v18  ;;  %v376_v36 = vmul.f32 %v780_v20, %v338_v21  ;;  %v377_v37 = vmul.f32 %v780_v20, %v339_v22  ;;  %v354_v17 = vld [vmem:[%s767_s30 + $0xa8] sm:$0xff] }
  0x20   : > { %v798_v38 = vrot.slane %v332_v27, %v368_v10  ;;  %v378_v39 = vmul.f32 %v780_v20, %v340_v23  ;;  %v379_v40 = vmul.f32 %v780_v20, %v341_v24  ;;  %v380_v41 = vmul.f32 %v780_v20, %v342_v25  ;;  %v351_v10 = vld [vmem:[%s767_s30 + $0x90] sm:$0xff] }
  0x21   : > { %v381_v42 = vmul.f32 %v780_v20, %v343_v26  ;;  %v382_v43 = vmul.f32 %v780_v20, %v344_v31  ;;  %v383_v44 = vmul.f32 %v780_v20, %v345_v32  ;;  %v384_v45 = vmul.f32 %v780_v20, %v346_v33  ;;  %v355_v27 = vld [vmem:[%s767_s30 + $0xb0] sm:$0xff] }
  0x22   : > { %v409_v46 = vadd.f32 %v798_v38, %v371_v28  ;;  %v410_v47 = vadd.f32 %v798_v38, %v372_v29  ;;  %v411_v48 = vadd.f32 %v798_v38, %v373_v30  ;;  %v412_v49 = vadd.f32 %v798_v38, %v374_v34  ;;  %v356_v28 = vld [vmem:[%s767_s30 + $0xb8] sm:$0xff] }
  0x23   : > { %v413_v50 = vadd.f32 %v798_v38, %v375_v35  ;;  %v414_v51 = vadd.f32 %v798_v38, %v376_v36  ;;  %v415_v52 = vadd.f32 %v798_v38, %v377_v37  ;;  %v416_v53 = vadd.f32 %v798_v38, %v378_v39  ;;  %v357_v37 = vld [vmem:[%s767_s30 + $0xc0] sm:$0xff] }
  0x24   : > { %v441_v54 = vmax.f32 %v409_v46, 0.0  ;;  %v442_v55 = vmax.f32 %v410_v47, 0.0  ;;  %v443_v56 = vmax.f32 %v411_v48, 0.0  ;;  %v444_v57 = vmax.f32 %v412_v49, 0.0 }
  0x25   : > { %v445_v60 = vmax.f32 %v413_v50, 0.0  ;;  %v446_v61 = vmax.f32 %v414_v51, 0.0  ;;  %v447_v62 = vmax.f32 %v415_v52, 0.0  ;;  %v448_v63 = vmax.f32 %v416_v53, 0.0  ;;  %v361_v50 = vld [vmem:[%s767_s30 + $0xe0] sm:$0xff]  ;;  %v362_v51 = vld [vmem:[%s767_s30 + $0xe8] sm:$0xff] }
  0x26   : > { %473 = vst [vmem:[%s816_s12] sm:$0xff] %v441_v54  ;;  %474 = vst [vmem:[%s816_s12 + $0x8] sm:$0xff] %v442_v55  ;;  %v417_v0 = vadd.f32 %v798_v38, %v379_v40  ;;  %v418_v1 = vadd.f32 %v798_v38, %v380_v41  ;;  %v419_v2 = vadd.f32 %v798_v38, %v381_v42 }
  0x27   : > { %475 = vst [vmem:[%s816_s12 + $0x10] sm:$0xff] %v443_v56  ;;  %476 = vst [vmem:[%s816_s12 + $0x18] sm:$0xff] %v444_v57  ;;  %v420_v3 = vadd.f32 %v798_v38, %v382_v43  ;;  %v421_v5 = vadd.f32 %v798_v38, %v383_v44  ;;  %v422_v6 = vadd.f32 %v798_v38, %v384_v45  ;;  %v358_v43 = vld [vmem:[%s767_s30 + $0xc8] sm:$0xff]  ;;  %v359_v44 = vld [vmem:[%s767_s30 + $0xd0] sm:$0xff] }
  0x28   : > { %477 = vst [vmem:[%s816_s12 + $0x20] sm:$0xff] %v445_v60  ;;  %478 = vst [vmem:[%s816_s12 + $0x28] sm:$0xff] %v446_v61  ;;  %v385_v7 = vmul.f32 %v780_v20, %v347_v58  ;;  %v386_v8 = vmul.f32 %v780_v20, %v348_v59  ;;  %v449_v12 = vmax.f32 %v417_v0, 0.0  ;;  %v450_v13 = vmax.f32 %v418_v1, 0.0  ;;  %v360_v45 = vld [vmem:[%s767_s30 + $0xd8] sm:$0xff]  ;;  %v363_v60 = vld [vmem:[%s767_s30 + $0xf0] sm:$0xff] }
  0x29   : > { %479 = vst [vmem:[%s816_s12 + $0x30] sm:$0xff] %v447_v62  ;;  %480 = vst [vmem:[%s816_s12 + $0x38] sm:$0xff] %v448_v63  ;;  %v451_v14 = vmax.f32 %v419_v2, 0.0  ;;  %v452_v15 = vmax.f32 %v420_v3, 0.0  ;;  %v453_v18 = vmax.f32 %v421_v5, 0.0  ;;  %v454_v19 = vmax.f32 %v422_v6, 0.0 }
  0x2a   : > { %v423_v21 = vadd.f32 %v798_v38, %v385_v7  ;;  %v424_v22 = vadd.f32 %v798_v38, %v386_v8  ;;  %481 = vst [vmem:[%s816_s12 + $0x40] sm:$0xff] %v449_v12  ;;  %482 = vst [vmem:[%s816_s12 + $0x48] sm:$0xff] %v450_v13  ;;  %v387_v23 = vmul.f32 %v780_v20, %v349_v4  ;;  %v364_v61 = vld [vmem:[%s767_s30 + $0xf8] sm:$0xff] }
  0x2b   : > { %483 = vst [vmem:[%s816_s12 + $0x50] sm:$0xff] %v451_v14  ;;  %484 = vst [vmem:[%s816_s12 + $0x58] sm:$0xff] %v452_v15  ;;  %v388_v24 = vmul.f32 %v780_v20, %v350_v9  ;;  %v389_v25 = vmul.f32 %v780_v20, %v351_v10  ;;  %v390_v26 = vmul.f32 %v780_v20, %v352_v11 }
  0x2c   : > { %485 = vst [vmem:[%s816_s12 + $0x60] sm:$0xff] %v453_v18  ;;  %486 = vst [vmem:[%s816_s12 + $0x68] sm:$0xff] %v454_v19  ;;  %v455_v29 = vmax.f32 %v423_v21, 0.0  ;;  %v456_v30 = vmax.f32 %v424_v22, 0.0  ;;  %v391_v31 = vmul.f32 %v780_v20, %v353_v16  ;;  %v392_v32 = vmul.f32 %v780_v20, %v354_v17 }
  0x2d   : > { %v425_v33 = vadd.f32 %v798_v38, %v387_v23  ;;  %v426_v34 = vadd.f32 %v798_v38, %v388_v24  ;;  %v427_v35 = vadd.f32 %v798_v38, %v389_v25  ;;  %v428_v36 = vadd.f32 %v798_v38, %v390_v26 }
  0x2e   : > { %487 = vst [vmem:[%s816_s12 + $0x70] sm:$0xff] %v455_v29  ;;  %488 = vst [vmem:[%s816_s12 + $0x78] sm:$0xff] %v456_v30  ;;  %v429_v39 = vadd.f32 %v798_v38, %v391_v31  ;;  %v430_v40 = vadd.f32 %v798_v38, %v392_v32  ;;  %v393_v41 = vmul.f32 %v780_v20, %v355_v27 }
  0x2f   : > { %v394_v42 = vmul.f32 %v780_v20, %v356_v28  ;;  %v457_v46 = vmax.f32 %v425_v33, 0.0  ;;  %v458_v47 = vmax.f32 %v426_v34, 0.0  ;;  %v459_v48 = vmax.f32 %v427_v35, 0.0 }
  0x30   : > { %v460_v49 = vmax.f32 %v428_v36, 0.0  ;;  %v461_v52 = vmax.f32 %v429_v39, 0.0  ;;  %v462_v53 = vmax.f32 %v430_v40, 0.0  ;;  %v431_v54 = vadd.f32 %v798_v38, %v393_v41 }
  0x31   : > { %v432_v55 = vadd.f32 %v798_v38, %v394_v42  ;;  %489 = vst [vmem:[%s816_s12 + $0x80] sm:$0xff] %v457_v46  ;;  %490 = vst [vmem:[%s816_s12 + $0x88] sm:$0xff] %v458_v47  ;;  %v395_v56 = vmul.f32 %v780_v20, %v357_v37  ;;  %v396_v57 = vmul.f32 %v780_v20, %v358_v43 }
  0x32   : > { %491 = vst [vmem:[%s816_s12 + $0x90] sm:$0xff] %v459_v48  ;;  %492 = vst [vmem:[%s816_s12 + $0x98] sm:$0xff] %v460_v49  ;;  %v397_v58 = vmul.f32 %v780_v20, %v359_v44  ;;  %v398_v59 = vmul.f32 %v780_v20, %v360_v45  ;;  %v463_v62 = vmax.f32 %v431_v54, 0.0  ;;  %v399_v0 = vmul.f32 %v780_v20, %v361_v50 }
  0x33   : > { %493 = vst [vmem:[%s816_s12 + $0xa0] sm:$0xff] %v461_v52  ;;  %494 = vst [vmem:[%s816_s12 + $0xa8] sm:$0xff] %v462_v53  ;;  %v464_v63 = vmax.f32 %v432_v55, 0.0  ;;  %v400_v1 = vmul.f32 %v780_v20, %v362_v51  ;;  %v433_v2 = vadd.f32 %v798_v38, %v395_v56  ;;  %v434_v3 = vadd.f32 %v798_v38, %v396_v57 }
  0x34   : > { %v435_v4 = vadd.f32 %v798_v38, %v397_v58  ;;  %v436_v5 = vadd.f32 %v798_v38, %v398_v59  ;;  %495 = vst [vmem:[%s816_s12 + $0xb0] sm:$0xff] %v463_v62  ;;  %v437_v6 = vadd.f32 %v798_v38, %v399_v0  ;;  %v401_v8 = vmul.f32 %v780_v20, %v363_v60 }
  0x35   : > { %496 = vst [vmem:[%s816_s12 + $0xb8] sm:$0xff] %v464_v63  ;;  %v438_v7 = vadd.f32 %v798_v38, %v400_v1  ;;  %v402_v9 = vmul.f32 %v780_v20, %v364_v61  ;;  %v465_v10 = vmax.f32 %v433_v2, 0.0  ;;  %v466_v11 = vmax.f32 %v434_v3, 0.0 }
  0x36   : > { %v467_v12 = vmax.f32 %v435_v4, 0.0  ;;  %v468_v13 = vmax.f32 %v436_v5, 0.0  ;;  %v469_v14 = vmax.f32 %v437_v6, 0.0  ;;  %v439_v16 = vadd.f32 %v798_v38, %v401_v8 }
  0x37   : > { %v470_v15 = vmax.f32 %v438_v7, 0.0  ;;  %v440_v17 = vadd.f32 %v798_v38, %v402_v9  ;;  %497 = vst [vmem:[%s816_s12 + $0xc0] sm:$0xff] %v465_v10  ;;  %498 = vst [vmem:[%s816_s12 + $0xc8] sm:$0xff] %v466_v11 }
  0x38   : > { %499 = vst [vmem:[%s816_s12 + $0xd0] sm:$0xff] %v467_v12  ;;  %500 = vst [vmem:[%s816_s12 + $0xd8] sm:$0xff] %v468_v13  ;;  %v471_v18 = vmax.f32 %v439_v16, 0.0 }
  0x39   : > { %501 = vst [vmem:[%s816_s12 + $0xe0] sm:$0xff] %v469_v14  ;;  %502 = vst [vmem:[%s816_s12 + $0xe8] sm:$0xff] %v470_v15  ;;  %v472_v20 = vmax.f32 %v440_v17, 0.0 }
  0x3a   : > { %503 = vst [vmem:[%s816_s12 + $0xf0] sm:$0xff] %v471_v18 }
  0x3b   : > { %504 = vst [vmem:[%s816_s12 + $0xf8] sm:$0xff] %v472_v20 }
  0x3c PF: > { %s15_s20 = sadd.s32 1, %s703_s20   ;;  %s929_s18 = smov %s699_s19 }
  0x3d   : > { %p12_p5 = scmp.ge.s32.totalorder %s15_s20, 4   ;;  %s930_s19 = smov %s932_s21 }
  0x3f   :  { %14 = sbr.rel (!%p12_p5) target bundleno = 2 (0x2), region = 82 }

// kernel: conv_bn_relu.2
= control target key start
LH: loop header
LB: loop body
LE: loop exit
PB: predicated region body
PF: predicated region fallthrough
CT: control target
= control target key end

     0   :  { %s1159_s15 = smov 0   ;;  %s1161_s16 = smov 0   ;;  %s1357_s0 = inlined_call_operand.vmem [shape: bf16[1,512,128], index: 0, kind: input, shape index: {}]   ;;  %s1358_s1 = inlined_call_operand.vmem [shape: bf16[1,128,128], index: 1, kind: input, shape index: {}]   ;;  %s1359_s2 = inlined_call_operand.vmem [shape: f32[1,512,128], index: 2, kind: output, shape index: {0}]   ;;  %s1360_s3 = inlined_call_operand.vmem [shape: f32[1,1,128], index: 3, kind: output, shape index: {1}]   ;;  %s1361_s4 = inlined_call_operand.vmem [shape: f32[1,1,128], index: 4, kind: output, shape index: {2}]  }
   0x1   :  { %s1163_s17 = smov 0  }
   0x2 LB: > { %s24_s18 = sadd.s32 1, %s1127_s16  ;;  %p937_p0 = scmp.ge.s32.totalorder %s1131_s17, 1  ;;  %s1131_s17 = sphi %s1163_s17, %s15_s17   ;;  %s1127_s16 = sphi %s1161_s16, %s1363_s16   ;;  %s1123_s15 = sphi %s1159_s15, %s1362_s15  }
   0x3   : > { %p25_p1 = scmp.ge.s32.totalorder %s24_s18, 2  ;;  %p198_p2 = scmp.lt.s32.totalorder %s1131_s17, 3 }
   0x5   : > { %s1365_s18 = smov (%p25_p1, %s24_s18), 0  ;;  %p199_p3 = pnand %p937_p0, %p198_p2 }
   0x6   : > { %s938_s19 = sshll.u32 (!%p199_p3), %s1123_s15, 5  ;;  %p942_p5 = scmp.ne.s32.totalorder (!%p199_p3), %s1123_s15, 0 }
   0x7   : > { %202 = sbr.rel (%p199_p3) target bundleno = 356 (0x164), region = 28  ;;  %p246_p4 = scmp.lt.s32.totalorder (!%p199_p3), %s938_s19, 63 }
   0xe   : > { %s1367_s19 = smov (!%p246_p4, %s938_s19), 63  ;;  %278 = sbr.rel (%p942_p5) target bundleno = 21 (0x15), region = 32 }
   0xf   : > { %s939_s20 = sshll.u32 %s1367_s19, 2  ;;  %s941_s21 = sshll.u32 %s1367_s19, 3  ;;  %v1133_v0 = vmov (!%p942_p5), 0.0  }
  0x10   : > { %s1183_s24 = scalar_lea.vmem %s1357_s0, %s939_s20  ;;  %s1188_s27 = scalar_lea.vmem %s1359_s2, %s941_s21  ;;  %279 = vst [vmem:[#allocation2] sm:$0x1] (!%p942_p5), %v1133_v0  ;;  %280 = vst [vmem:[#allocation3] sm:$0x1] (!%p942_p5), %v1133_v0 }
  0x15 PF: > { %v1085_v1 = vld [vmem:[%s1358_s1] sm:$0xff]   ;;  %v1086_v2 = vld [vmem:[%s1358_s1 + $0x8] sm:$0xff]   ;;  %v1087_v3 = vld [vmem:[%s1358_s1 + $0x10] sm:$0xff]   ;;  %p967_p6 = scmp.ne.s32.totalorder %s1123_s15, 1 }
  0x16   : > { %996 = vmatprep.subr.bf16.mxu0 %v1085_v1  ;;  %1044 = vmatprep.subr.bf16.mxu1 %v1085_v1  ;;  %v1088_v4 = vld [vmem:[%s1358_s1 + $0x18] sm:$0xff]   ;;  %v1093_v5 = vld [vmem:[%s1183_s24] sm:$0xff]   ;;  %v1090_v7 = vld [vmem:[%s1358_s1 + $0x28] sm:$0xff]  }
  0x17   : > { %997 = vmatpush3.bf16.msra.mxu0 %v1085_v1  ;;  %1052 = vmatpush3.bf16.msra.mxu1 %v1085_v1  ;;  %v1089_v6 = vld [vmem:[%s1358_s1 + $0x20] sm:$0xff]   ;;  %v1091_v9 = vld [vmem:[%s1358_s1 + $0x30] sm:$0xff]   ;;  %v1092_v10 = vld [vmem:[%s1358_s1 + $0x38] sm:$0xff]  }
  0x18   : > { %998 = vmatprep.subr.bf16.mxu0 %v1086_v2  ;;  %1045 = vmatprep.subr.bf16.mxu1 %v1086_v2  ;;  %v1101_v8 = vld [vmem:[%s1183_s24 + $0x40] sm:$0xff]   ;;  %v1094_v11 = vld [vmem:[%s1183_s24 + $0x8] sm:$0xff]   ;;  %v1095_v13 = vld [vmem:[%s1183_s24 + $0x10] sm:$0xff]  }
  0x19   : > { %1012 = vmatprep.mubr.bf16.mxu0 %v1093_v5  ;;  %1028 = vmatprep.mubr.bf16.mxu1 %v1101_v8  ;;  %v1102_v12 = vld [vmem:[%s1183_s24 + $0x48] sm:$0xff]   ;;  %v1103_v14 = vld [vmem:[%s1183_s24 + $0x50] sm:$0xff]   ;;  %v1096_v15 = vld [vmem:[%s1183_s24 + $0x18] sm:$0xff]  }
  0x1a   : > { %v1104_v16 = vld [vmem:[%s1183_s24 + $0x58] sm:$0xff]   ;;  %v1097_v17 = vld [vmem:[%s1183_s24 + $0x20] sm:$0xff]   ;;  %v1098_v19 = vld [vmem:[%s1183_s24 + $0x28] sm:$0xff]  }
  0x1b   : > { %999 = vmatpush3.bf16.msra.mxu0 %v1086_v2  ;;  %1053 = vmatpush3.bf16.msra.mxu1 %v1086_v2  ;;  %v1105_v18 = vld [vmem:[%s1183_s24 + $0x60] sm:$0xff]   ;;  %v1106_v20 = vld [vmem:[%s1183_s24 + $0x68] sm:$0xff]   ;;  %v1099_v21 = vld [vmem:[%s1183_s24 + $0x30] sm:$0xff]  }
  0x1c   : > { %1000 = vmatprep.subr.bf16.mxu0 %v1087_v3  ;;  %1046 = vmatprep.subr.bf16.mxu1 %v1087_v3  ;;  %v1107_v22 = vld [vmem:[%s1183_s24 + $0x70] sm:$0xff]   ;;  %v1100_v23 = vld [vmem:[%s1183_s24 + $0x38] sm:$0xff]  }
  0x1d   : > { %v1108_v24 = vld [vmem:[%s1183_s24 + $0x78] sm:$0xff]  }
  0x1f   : > { %1001 = vmatpush3.bf16.msra.mxu0 %v1087_v3  ;;  %1054 = vmatpush3.bf16.msra.mxu1 %v1087_v3 }
  0x20   : > { %1002 = vmatprep.subr.bf16.mxu0 %v1088_v4  ;;  %1047 = vmatprep.subr.bf16.mxu1 %v1088_v4 }
  0x23   : > { %1003 = vmatpush3.bf16.msra.mxu0 %v1088_v4  ;;  %1055 = vmatpush3.bf16.msra.mxu1 %v1088_v4 }
  0x24   : > { %1004 = vmatprep.subr.bf16.mxu0 %v1089_v6  ;;  %1048 = vmatprep.subr.bf16.mxu1 %v1089_v6 }
  0x27   : > { %1005 = vmatpush3.bf16.msra.mxu0 %v1089_v6  ;;  %1056 = vmatpush3.bf16.msra.mxu1 %v1089_v6 }
  0x28   : > { %1006 = vmatprep.subr.bf16.mxu0 %v1090_v7  ;;  %1049 = vmatprep.subr.bf16.mxu1 %v1090_v7 }
  0x2b   : > { %1007 = vmatpush3.bf16.msra.mxu0 %v1090_v7  ;;  %1057 = vmatpush3.bf16.msra.mxu1 %v1090_v7 }
  0x2c   : > { %1008 = vmatprep.subr.bf16.mxu0 %v1091_v9  ;;  %1050 = vmatprep.subr.bf16.mxu1 %v1091_v9 }
  0x2f   : > { %1009 = vmatpush3.bf16.msra.mxu0 %v1091_v9  ;;  %1058 = vmatpush3.bf16.msra.mxu1 %v1091_v9 }
  0x30   : > { %1010 = vmatprep.subr.bf16.mxu0 %v1092_v10  ;;  %1051 = vmatprep.subr.bf16.mxu1 %v1092_v10 }
  0x33   : > { %1011 = vmatpush3.bf16.msra.mxu0 %v1092_v10  ;;  %1059 = vmatpush3.bf16.msra.mxu1 %v1092_v10 }
  0x36   : > { %1013 = vmatmul.mubr.bf16.vlgmr.msra.gmra.mrb[0].mxu0 %v1094_v11  ;;  %1029 = vmatmul.mubr.bf16.vlgmr.msra.gmra.mrb[0].mxu1 %v1102_v12 }
  0x37   : > { %1016 = vmatprep.mubr.bf16.mxu0 %v1095_v13  ;;  %1032 = vmatprep.mubr.bf16.mxu1 %v1103_v14 }
  0x3e   : > { %1017 = vmatmul.mubr.bf16.gmra.mrb[4].mxu0 %v1096_v15  ;;  %1033 = vmatmul.mubr.bf16.gmra.mrb[4].mxu1 %v1104_v16 }
  0x3f   : > { %1020 = vmatprep.mubr.bf16.mxu0 %v1097_v17  ;;  %1036 = vmatprep.mubr.bf16.mxu1 %v1105_v18 }
  0x46   : > { %1021 = vmatmul.mubr.bf16.gmra.mrb[8].mxu0 %v1098_v19  ;;  %1037 = vmatmul.mubr.bf16.gmra.mrb[8].mxu1 %v1106_v20 }
  0x47   : > { %1024 = vmatprep.mubr.bf16.mxu0 %v1099_v21  ;;  %1040 = vmatprep.mubr.bf16.mxu1 %v1107_v22 }
  0x4e   : > { %1025 = vmatmul.mubr.bf16.gmra.mrb[12].mxu0 %v1100_v23  ;;  %1041 = vmatmul.mubr.bf16.gmra.mrb[12].mxu1 %v1108_v24 }
 0x109   : > { %v1014_v25 = vpop.f32.mrb[0].mxu0  ;;  %v1231_v26 = vpop.f32.mrb[0].mxu1 }
 0x10a   : > { %636 = vst [vmem:[%s1188_s27 + $0x10] sm:$0xff] %v1014_v25  ;;  %v507_v27 = vpop.f32.mrb[1].mxu0  ;;  %652 = vst [vmem:[%s1188_s27 + $0x90] sm:$0xff] %v1231_v26  ;;  %v1236_v28 = vpop.f32.mrb[1].mxu1  ;;  %v709_v36 = vmul.f32 %v1014_v25, %v1014_v25 }
 0x10b   : > { %634 = vst [vmem:[%s1188_s27] sm:$0xff] %v507_v27  ;;  %v1015_v29 = vpop.f32.mrb[2].mxu0  ;;  %650 = vst [vmem:[%s1188_s27 + $0x80] sm:$0xff] %v1236_v28  ;;  %v1241_v30 = vpop.f32.mrb[2].mxu1  ;;  %v707_v33 = vmul.f32 %v507_v27, %v507_v27 }
 0x10c   : > { %637 = vst [vmem:[%s1188_s27 + $0x18] sm:$0xff] %v1015_v29  ;;  %v510_v31 = vpop.f32.mrb[3].mxu0  ;;  %653 = vst [vmem:[%s1188_s27 + $0x98] sm:$0xff] %v1241_v30  ;;  %v1246_v32 = vpop.f32.mrb[3].mxu1  ;;  %v710_v39 = vmul.f32 %v1015_v29, %v1015_v29 }
 0x10d   : > { %635 = vst [vmem:[%s1188_s27 + $0x8] sm:$0xff] %v510_v31  ;;  %v667_v34 = vadd.f32 %v510_v31, %v507_v27  ;;  %v708_v35 = vmul.f32 %v510_v31, %v510_v31  ;;  %651 = vst [vmem:[%s1188_s27 + $0x88] sm:$0xff] %v1246_v32 }
 0x10f   : > { %v668_v37 = vadd.f32 %v1014_v25, %v667_v34  ;;  %v739_v38 = vadd.f32 %v708_v35, %v707_v33 }
 0x111   : > { %v740_v40 = vadd.f32 %v739_v38, %v709_v36  ;;  %v1018_v41 = vpop.f32.mrb[4].mxu0  ;;  %v669_v42 = vadd.f32 %v1015_v29, %v668_v37  ;;  %v1251_v43 = vpop.f32.mrb[4].mxu1 }
 0x112   : > { %640 = vst [vmem:[%s1188_s27 + $0x30] sm:$0xff] %v1018_v41  ;;  %v523_v44 = vpop.f32.mrb[5].mxu0  ;;  %656 = vst [vmem:[%s1188_s27 + $0xb0] sm:$0xff] %v1251_v43  ;;  %v1256_v45 = vpop.f32.mrb[5].mxu1  ;;  %v713_v56 = vmul.f32 %v1018_v41, %v1018_v41 }
 0x113   : > { %638 = vst [vmem:[%s1188_s27 + $0x20] sm:$0xff] %v523_v44  ;;  %v670_v46 = vadd.f32 %v669_v42, %v523_v44  ;;  %v711_v47 = vmul.f32 %v523_v44, %v523_v44  ;;  %v741_v48 = vadd.f32 %v740_v40, %v710_v39  ;;  %v1019_v49 = vpop.f32.mrb[6].mxu0  ;;  %654 = vst [vmem:[%s1188_s27 + $0xa0] sm:$0xff] %v1256_v45  ;;  %v1261_v50 = vpop.f32.mrb[6].mxu1 }
 0x114   : > { %641 = vst [vmem:[%s1188_s27 + $0x38] sm:$0xff] %v1019_v49  ;;  %v526_v51 = vpop.f32.mrb[7].mxu0  ;;  %657 = vst [vmem:[%s1188_s27 + $0xb8] sm:$0xff] %v1261_v50  ;;  %v1266_v52 = vpop.f32.mrb[7].mxu1  ;;  %v714_v59 = vmul.f32 %v1019_v49, %v1019_v49  ;;  %v723_v42 = vmul.f32 %v1236_v28, %v1236_v28 }
 0x115   : > { %v742_v53 = vadd.f32 %v741_v48, %v711_v47  ;;  %639 = vst [vmem:[%s1188_s27 + $0x28] sm:$0xff] %v526_v51  ;;  %v671_v54 = vadd.f32 %v670_v46, %v526_v51  ;;  %v712_v55 = vmul.f32 %v526_v51, %v526_v51  ;;  %655 = vst [vmem:[%s1188_s27 + $0xa8] sm:$0xff] %v1266_v52 }
 0x116   : > { %v725_v51 = vmul.f32 %v1231_v26, %v1231_v26 }
 0x117   : > { %v672_v57 = vadd.f32 %v1018_v41, %v671_v54  ;;  %v743_v58 = vadd.f32 %v742_v53, %v712_v55  ;;  %v726_v55 = vmul.f32 %v1241_v30, %v1241_v30 }
 0x119   : > { %v744_v60 = vadd.f32 %v743_v58, %v713_v56  ;;  %v1022_v61 = vpop.f32.mrb[8].mxu0  ;;  %v673_v62 = vadd.f32 %v1019_v49, %v672_v57  ;;  %v1271_v63 = vpop.f32.mrb[8].mxu1  ;;  %v724_v49 = vmul.f32 %v1246_v32, %v1246_v32 }
 0x11a   : > { %644 = vst [vmem:[%s1188_s27 + $0x50] sm:$0xff] %v1022_v61  ;;  %v539_v0 = vpop.f32.mrb[9].mxu0  ;;  %660 = vst [vmem:[%s1188_s27 + $0xd0] sm:$0xff] %v1271_v63  ;;  %v1276_v1 = vpop.f32.mrb[9].mxu1  ;;  %v717_v12 = vmul.f32 %v1022_v61, %v1022_v61 }
 0x11b   : > { %642 = vst [vmem:[%s1188_s27 + $0x40] sm:$0xff] %v539_v0  ;;  %v674_v2 = vadd.f32 %v673_v62, %v539_v0  ;;  %v715_v3 = vmul.f32 %v539_v0, %v539_v0  ;;  %v745_v4 = vadd.f32 %v744_v60, %v714_v59  ;;  %v1023_v5 = vpop.f32.mrb[10].mxu0  ;;  %658 = vst [vmem:[%s1188_s27 + $0xc0] sm:$0xff] %v1276_v1  ;;  %v1281_v6 = vpop.f32.mrb[10].mxu1 }
 0x11c   : > { %645 = vst [vmem:[%s1188_s27 + $0x58] sm:$0xff] %v1023_v5  ;;  %v542_v7 = vpop.f32.mrb[11].mxu0  ;;  %661 = vst [vmem:[%s1188_s27 + $0xd8] sm:$0xff] %v1281_v6  ;;  %v1286_v8 = vpop.f32.mrb[11].mxu1  ;;  %v718_v15 = vmul.f32 %v1023_v5, %v1023_v5 }
 0x11d   : > { %v746_v9 = vadd.f32 %v745_v4, %v715_v3  ;;  %643 = vst [vmem:[%s1188_s27 + $0x48] sm:$0xff] %v542_v7  ;;  %v675_v10 = vadd.f32 %v674_v2, %v542_v7  ;;  %v716_v11 = vmul.f32 %v542_v7, %v542_v7  ;;  %659 = vst [vmem:[%s1188_s27 + $0xc8] sm:$0xff] %v1286_v8 }
 0x11f   : > { %v676_v13 = vadd.f32 %v1022_v61, %v675_v10  ;;  %v747_v14 = vadd.f32 %v746_v9, %v716_v11  ;;  %v728_v61 = vmul.f32 %v1266_v52, %v1266_v52  ;;  %v732_v9 = vmul.f32 %v1286_v8, %v1286_v8 }
 0x121   : > { %v748_v16 = vadd.f32 %v747_v14, %v717_v12  ;;  %v1026_v17 = vpop.f32.mrb[12].mxu0  ;;  %v677_v18 = vadd.f32 %v1023_v5, %v676_v13  ;;  %v1291_v19 = vpop.f32.mrb[12].mxu1 }
 0x122   : > { %648 = vst [vmem:[%s1188_s27 + $0x70] sm:$0xff] %v1026_v17  ;;  %v555_v20 = vpop.f32.mrb[13].mxu0  ;;  %664 = vst [vmem:[%s1188_s27 + $0xf0] sm:$0xff] %v1291_v19  ;;  %v619_v21 = vpop.f32.mrb[13].mxu1  ;;  %v721_v36 = vmul.f32 %v1026_v17, %v1026_v17 }
 0x123   : > { %646 = vst [vmem:[%s1188_s27 + $0x60] sm:$0xff] %v555_v20  ;;  %v678_v22 = vadd.f32 %v677_v18, %v555_v20  ;;  %v719_v23 = vmul.f32 %v555_v20, %v555_v20  ;;  %v749_v24 = vadd.f32 %v748_v16, %v718_v15  ;;  %v1027_v25 = vpop.f32.mrb[14].mxu0  ;;  %662 = vst [vmem:[%s1188_s27 + $0xe0] sm:$0xff] %v619_v21  ;;  %v1043_v27 = vpop.f32.mrb[14].mxu1 }
 0x124   : > { %649 = vst [vmem:[%s1188_s27 + $0x78] sm:$0xff] %v1027_v25  ;;  %v558_v29 = vpop.f32.mrb[15].mxu0  ;;  %665 = vst [vmem:[%s1188_s27 + $0xf8] sm:$0xff] %v1043_v27  ;;  %v622_v31 = vpop.f32.mrb[15].mxu1  ;;  %v722_v39 = vmul.f32 %v1027_v25, %v1027_v25 }
 0x125   : > { %v750_v33 = vadd.f32 %v749_v24, %v719_v23  ;;  %647 = vst [vmem:[%s1188_s27 + $0x68] sm:$0xff] %v558_v29  ;;  %v679_v34 = vadd.f32 %v678_v22, %v558_v29  ;;  %v720_v35 = vmul.f32 %v558_v29, %v558_v29  ;;  %663 = vst [vmem:[%s1188_s27 + $0xe8] sm:$0xff] %v622_v31 }
 0x126   : > { %v736_v18 = vmul.f32 %v622_v31, %v622_v31 }
 0x127   : > { %v680_v37 = vadd.f32 %v1026_v17, %v679_v34  ;;  %v751_v38 = vadd.f32 %v750_v33, %v720_v35 }
 0x129   : > { %v752_v40 = vadd.f32 %v751_v38, %v721_v36  ;;  %v681_v41 = vadd.f32 %v1027_v25, %v680_v37 }
 0x12b   : > { %v682_v44 = vadd.f32 %v681_v41, %v1236_v28  ;;  %v753_v46 = vadd.f32 %v752_v40, %v722_v39  ;;  %v727_v28 = vmul.f32 %v1256_v45, %v1256_v45  ;;  %v706_v41 = vld [vmem:[#allocation3] sm:$0x1] }
 0x12d   : > { %v754_v47 = vadd.f32 %v753_v46, %v723_v42  ;;  %v683_v48 = vadd.f32 %v682_v44, %v1246_v32 }
 0x12f   : > { %v684_v53 = vadd.f32 %v1231_v26, %v683_v48  ;;  %v755_v54 = vadd.f32 %v754_v47, %v724_v49  ;;  %v729_v26 = vmul.f32 %v1251_v43, %v1251_v43 }
 0x131   : > { %v756_v56 = vadd.f32 %v755_v54, %v725_v51  ;;  %v685_v57 = vadd.f32 %v1241_v30, %v684_v53  ;;  %v730_v30 = vmul.f32 %v1261_v50, %v1261_v50 }
 0x133   : > { %v686_v58 = vadd.f32 %v685_v57, %v1256_v45  ;;  %v757_v59 = vadd.f32 %v756_v56, %v726_v55  ;;  %v731_v45 = vmul.f32 %v1276_v1, %v1276_v1 }
 0x135   : > { %v758_v60 = vadd.f32 %v757_v59, %v727_v28  ;;  %v687_v32 = vadd.f32 %v686_v58, %v1266_v52 }
 0x137   : > { %v688_v62 = vadd.f32 %v1251_v43, %v687_v32  ;;  %v759_v0 = vadd.f32 %v758_v60, %v728_v61  ;;  %v733_v43 = vmul.f32 %v1271_v63, %v1271_v63 }
 0x139   : > { %v760_v2 = vadd.f32 %v759_v0, %v729_v26  ;;  %v689_v3 = vadd.f32 %v1261_v50, %v688_v62  ;;  %v734_v50 = vmul.f32 %v1281_v6, %v1281_v6 }
 0x13b   : > { %v690_v4 = vadd.f32 %v689_v3, %v1276_v1  ;;  %v761_v5 = vadd.f32 %v760_v2, %v730_v30  ;;  %v735_v1 = vmul.f32 %v619_v21, %v619_v21 }
 0x13d   : > { %v762_v7 = vadd.f32 %v761_v5, %v731_v45  ;;  %v691_v52 = vadd.f32 %v690_v4, %v1286_v8  ;;  %v737_v8 = vmul.f32 %v1291_v19, %v1291_v19 }
 0x13f   : > { %v692_v10 = vadd.f32 %v1271_v63, %v691_v52  ;;  %v763_v11 = vadd.f32 %v762_v7, %v732_v9  ;;  %v738_v63 = vmul.f32 %v1043_v27, %v1043_v27 }
 0x141   : > { %v764_v12 = vadd.f32 %v763_v11, %v733_v43  ;;  %v693_v13 = vadd.f32 %v1281_v6, %v692_v10 }
 0x143   : > { %v694_v14 = vadd.f32 %v693_v13, %v619_v21  ;;  %v765_v15 = vadd.f32 %v764_v12, %v734_v50 }
 0x145   : > { %v766_v16 = vadd.f32 %v765_v15, %v735_v1  ;;  %v695_v17 = vadd.f32 %v694_v14, %v622_v31  ;;  %v666_v31 = vld [vmem:[#allocation2] sm:$0x1] }
 0x147   : > { %v696_v20 = vadd.f32 %v1291_v19, %v695_v17  ;;  %v767_v22 = vadd.f32 %v766_v16, %v736_v18 }
 0x149   : > { %v697_v23 = vadd.f32 %v1043_v27, %v696_v20  ;;  %v768_v24 = vadd.f32 %v767_v22, %v737_v8 }
 0x14b   : > { %v698_v25 = vrot.slane %v697_v23, 4  ;;  %v769_v29 = vadd.f32 %v768_v24, %v738_v63 }
 0x14d   : > { %v699_v33 = vadd.f32 %v698_v25, %v697_v23  ;;  %v770_v34 = vrot.slane %v769_v29, 4 }
 0x14f   : > { %v700_v6 = vrot.slane %v699_v33, 2  ;;  %v771_v35 = vadd.f32 %v770_v34, %v769_v29 }
 0x151   : > { %v701_v21 = vadd.f32 %v700_v6, %v699_v33  ;;  %v772_v36 = vrot.slane %v771_v35, 2 }
 0x153   : > { %v702_v37 = vrot.slane %v701_v21, 1  ;;  %v773_v38 = vadd.f32 %v772_v36, %v771_v35 }
 0x155   : > { %v703_v39 = vadd.f32 %v702_v37, %v701_v21  ;;  %v774_v40 = vrot.slane %v773_v38, 1  ;;  %781 = sbr.rel (%p967_p6) target bundleno = 356 (0x164), region = 36 }
 0x157   : > { %v704_v42 = vadd.f32 %v703_v39, %v666_v31  ;;  %v775_v19 = vadd.f32 %v774_v40, %v773_v38 }
 0x159   : > { %705 = vst [vmem:[#allocation2] sm:$0x1] %v704_v42  ;;  %v776_v44 = vadd.f32 %v775_v19, %v706_v41 }
 0x15b   : > { %777 = vst [vmem:[#allocation3] sm:$0x1] %v776_v44 }
 0x160   : > { %v782_v27 = vld [vmem:[#allocation2] sm:$0x1] }
 0x161   : > { %783 = vst [vmem:[%s1360_s3] sm:$0x1] %v782_v27 }
 0x162   : > { %v784_v46 = vld [vmem:[#allocation3] sm:$0x1] }
 0x163   : > { %785 = vst [vmem:[%s1361_s4] sm:$0x1] %v784_v46 }
 0x164 PF: > { %s15_s17 = sadd.s32 1, %s1131_s17   ;;  %s1362_s15 = smov %s1127_s16 }
 0x165   : > { %p12_p7 = scmp.ge.s32.totalorder %s15_s17, 4   ;;  %s1363_s16 = smov %s1365_s18 }
 0x167   :  { %14 = sbr.rel (!%p12_p7) target bundleno = 2 (0x2), region = 93 }

</bundles_post_ra>
